<compile_context>
chip_gen: v5e
topology: v5e:2x2
jax: 0.10.0
libtpu: 0.0.40
codegen_flags: <defaults>
</compile_context>

<pallas_src>
import jax
import jax.numpy as jnp
from jax import lax
from jax.experimental import pallas as pl
from jax.experimental.pallas import tpu as pltpu

CFG_TEMPERATURE = 1.0  # deterministic stand-in for CFG.temperature
_EPS = 1e-12


def _clip_moco_kernel(scale_ref, img_ref, txt_ref, kimg_ref, ktxt_ref, out_ref):
    """One query tile of the CLIP-MoCO loss.

    For grid step i (global query rows [i*TM, (i+1)*TM)):
      out[r, 0] = (lse(logits_text[r, :])  - logits_text[r, g(r)])
                + (lse(logits_image[r, :]) - logits_image[r, g(r)])
    with g(r) the global row index (labels = arange(B)).  The mean over rows
    and the final /2 are done in the wrapper.
    """
    scale = scale_ref[0, 0]  # exp(logit_scale), precomputed in the wrapper

    def l2_normalize(x):
        x = x.astype(jnp.float32)
        sq = jnp.sum(x * x, axis=-1, keepdims=True)
        return x * lax.rsqrt(jnp.maximum(sq, _EPS))

    tm = txt_ref.shape[0]
    start = pl.multiple_of(pl.program_id(0) * tm, tm)

    # Queries: normalize, fold the logit scale into the (TM, D) operand, then
    # cast to bf16 for the MXU (accumulation stays f32).
    txt = (l2_normalize(txt_ref[...]) * scale).astype(jnp.bfloat16)
    img = (l2_normalize(img_ref[...]) * scale).astype(jnp.bfloat16)

    # Keys: full (B, D), resident across all query tiles.
    kimg = l2_normalize(kimg_ref[...]).astype(jnp.bfloat16)
    ktxt = l2_normalize(ktxt_ref[...]).astype(jnp.bfloat16)

    # Key rows aligned with this query tile (diagonal / label rows).
    kimg_d = l2_normalize(kimg_ref[pl.ds(start, tm), :]).astype(jnp.bfloat16)
    ktxt_d = l2_normalize(ktxt_ref[pl.ds(start, tm), :]).astype(jnp.bfloat16)

    dims = (((1,), (1,)), ((), ()))  # contract last dims; no transposed copy

    def lse_rows(logits):  # (TM, B) -> (TM, 1)
        m = jnp.max(logits, axis=-1, keepdims=True)
        return m + jnp.log(jnp.sum(jnp.exp(logits - m), axis=-1, keepdims=True))

    def row_diag(q, k):  # diag of q @ k.T restricted to this tile, (TM, 1)
        return jnp.sum(q.astype(jnp.float32) * k.astype(jnp.float32),
                       axis=-1, keepdims=True)

    # Text vs. key-image, then image vs. key-text (sequential so only one
    # (TM, B) logits slab is live at a time).
    logits_t = lax.dot_general(txt, kimg, dims, preferred_element_type=jnp.float32)
    ce_t = lse_rows(logits_t) - row_diag(txt, kimg_d)

    logits_i = lax.dot_general(img, ktxt, dims, preferred_element_type=jnp.float32)
    ce_i = lse_rows(logits_i) - row_diag(img, ktxt_d)

    out_ref[...] = ce_t + ce_i


def _pick_tile_m(b):
    # Prefer MXU-native M tiles; fall back to the full batch for tiny/odd B.
    for tm in (256, 128, 64, 32, 16, 8):
        if b % tm == 0:
            return tm
    return b


def _pad_lanes(x, d_pad):
    d = x.shape[-1]
    if d == d_pad:
        return x
    return jnp.pad(x, ((0, 0), (0, d_pad - d)))


def clip_moco_loss(image_embed, text_embed, key_image_embed, key_text_embed,
                   logit_scale):
    b, d = image_embed.shape
    d_pad = max(128, ((d + 127) // 128) * 128)   # lane-dense contraction dim
    tm = _pick_tile_m(b)
    num_tiles = b // tm

    img_p = _pad_lanes(image_embed, d_pad)
    txt_p = _pad_lanes(text_embed, d_pad)
    kimg_p = _pad_lanes(key_image_embed, d_pad)
    ktxt_p = _pad_lanes(key_text_embed, d_pad)

    # exp(logit_scale) hoisted out of the kernel; passed as an SMEM scalar.
    scale = jnp.exp(logit_scale).astype(jnp.float32).reshape(1, 1)

    smem_spec = pl.BlockSpec(memory_space=pltpu.MemorySpace.SMEM)
    q_spec = pl.BlockSpec((tm, d_pad), lambda i: (i, 0))     # pipelined tiles
    k_spec = pl.BlockSpec((b, d_pad), lambda i: (0, 0))      # resident keys
    out_spec = pl.BlockSpec((tm, 1), lambda i: (i, 0))

    # Rough VMEM estimate; only raise the scoped limit when it is actually
    # needed (large B / D), keep headroom below physical VMEM.
    in_bytes = jnp.dtype(image_embed.dtype).itemsize
    est = (2 * 2 * tm * d_pad * in_bytes        # double-buffered query tiles
           + 2 * 2 * b * d_pad * in_bytes       # resident key blocks
           + 4 * (tm + b) * d_pad * 4           # normalized f32 temporaries
           + 2 * (tm + b) * d_pad * 2           # bf16 MXU operands
           + 2 * tm * b * 4                     # live (TM, B) logits + slack
           + 2 * 2 * tm * 4)                    # per-row output buffers
    vmem_limit = None
    if est > 32 * 1024 * 1024:
        vmem_limit = min(int(est * 1.25), 100 * 1024 * 1024)

    per_row = pl.pallas_call(
        _clip_moco_kernel,
        grid=(num_tiles,),
        in_specs=[smem_spec, q_spec, q_spec, k_spec, k_spec],
        out_specs=out_spec,
        out_shape=jax.ShapeDtypeStruct((b, 1), jnp.float32),
        compiler_params=pltpu.CompilerParams(
            dimension_semantics=("parallel",),
            vmem_limit_bytes=vmem_limit,
        ),
    )(scale, img_p, txt_p, kimg_p, ktxt_p)

    # loss = (CE_text + CE_image) / 2, each a mean over B rows.
    return 0.5 * jnp.mean(per_row)


def _reference_loss(image_embed, text_embed, key_image_embed, key_text_embed,
                    logit_scale):
    """Pure-JAX f32 reference mirroring the PyTorch module."""
    def norm(x):
        return x / jnp.linalg.norm(x, axis=-1, keepdims=True)

    scale = jnp.exp(logit_scale)
    img, txt = norm(image_embed), norm(text_embed)
    kimg, ktxt = norm(key_image_embed), norm(key_text_embed)
    logits_per_text = txt @ kimg.T * scale
    logits_per_image = img @ ktxt.T * scale
    labels = jnp.arange(logits_per_image.shape[0])

    def ce(logits):
        logp = jax.nn.log_softmax(logits, axis=-1)
        return -jnp.mean(logp[jnp.arange(logits.shape[0]), labels])

    return (ce(logits_per_text) + ce(logits_per_image)) / 2.0


if __name__ == "__main__":
    B, D = 8, 128  # small batch; D kept lane-dense (multiple of 128)

    key = jax.random.PRNGKey(0)
    k1, k2, k3, k4 = jax.random.split(key, 4)
    image_embed = jax.random.normal(k1, (B, D), dtype=jnp.float32)
    text_embed = jax.random.normal(k2, (B, D), dtype=jnp.float32)
    key_image_embed = jax.random.normal(k3, (B, D), dtype=jnp.float32)
    key_text_embed = jax.random.normal(k4, (B, D), dtype=jnp.float32)

    # Parameter init: logit_scale = ones([]) * CFG.temperature (stand-in 1.0).
    logit_scale = jnp.array(1.0 * CFG_TEMPERATURE, dtype=jnp.float32)

    loss = clip_moco_loss(image_embed, text_embed, key_image_embed,
                          key_text_embed, logit_scale)
    loss = jax.block_until_ready(loss)

    ref = _reference_loss(image_embed, text_embed, key_image_embed,
                          key_text_embed, logit_scale)
    # Tolerance widened: MXU operands are bf16 (f32 accumulation).
    assert jnp.allclose(loss, ref, rtol=2e-2, atol=5e-2), (loss, ref)

    print("KERNEL_OK")
</pallas_src>

<mosaic_0001>
module attributes {stable_mosaic.version = 11 : i64} {
  func.func @_clip_moco_kernel(%arg0: i32, %arg1: memref<1x1xf32, #tpu.memory_space<smem>>, %arg2: memref<8x128xf32, #tpu.memory_space<vmem>>, %arg3: memref<8x128xf32, #tpu.memory_space<vmem>>, %arg4: memref<8x128xf32, #tpu.memory_space<vmem>>, %arg5: memref<8x128xf32, #tpu.memory_space<vmem>>, %arg6: memref<8x1xf32, #tpu.memory_space<vmem>>) attributes {dimension_semantics = [#tpu.dimension_semantics<parallel>], iteration_bounds = array<i64: 1>, scalar_prefetch = 0 : i64, scratch_operands = 0 : i64, tpu.core_type = #tpu.core_type<tc>, window_params = [{transform_indices = @transform_0, window_bounds = array<i64: 1, 1>}, {transform_indices = @transform_1, window_bounds = array<i64: 8, 128>}, {transform_indices = @transform_2, window_bounds = array<i64: 8, 128>}, {pipeline_mode = #tpu.pipeline_mode<synchronous>, transform_indices = @transform_3, window_bounds = array<i64: 8, 128>}, {pipeline_mode = #tpu.pipeline_mode<synchronous>, transform_indices = @transform_4, window_bounds = array<i64: 8, 128>}, {transform_indices = @transform_5, window_bounds = array<i64: 8, 1>}]} {
    %c0 = arith.constant 0 : index
    %c0_0 = arith.constant 0 : index
    %0 = memref.load %arg1[%c0, %c0_0] : memref<1x1xf32, #tpu.memory_space<smem>>
    %c8_i32 = arith.constant 8 : i32
    %1 = arith.muli %arg0, %c8_i32 : i32
    %2 = tpu.assume_multiple %1, 8 : i32
    %c0_1 = arith.constant 0 : index
    %c0_2 = arith.constant 0 : index
    %3 = vector.load %arg3[%c0_1, %c0_2] : memref<8x128xf32, #tpu.memory_space<vmem>>, vector<8x128xf32>
    %4 = arith.mulf %3, %3 : vector<8x128xf32>
    %cst = arith.constant dense<0.000000e+00> : vector<8xf32>
    %5 = vector.multi_reduction <add>, %4, %cst [1] : vector<8x128xf32> to vector<8xf32>
    %6 = vector.shape_cast %5 : vector<8xf32> to vector<8x1xf32>
    %cst_3 = arith.constant 9.99999996E-13 : f32
    %7 = vector.broadcast %cst_3 : f32 to vector<8x1xf32>
    %8 = arith.maximumf %6, %7 : vector<8x1xf32>
    %9 = math.rsqrt %8 : vector<8x1xf32>
    %10 = vector.broadcast %9 : vector<8x1xf32> to vector<8x128xf32>
    %11 = arith.mulf %3, %10 : vector<8x128xf32>
    %12 = vector.broadcast %0 : f32 to vector<8x128xf32>
    %13 = arith.mulf %11, %12 : vector<8x128xf32>
    %14 = arith.truncf %13 : vector<8x128xf32> to vector<8x128xbf16>
    %c0_4 = arith.constant 0 : index
    %c0_5 = arith.constant 0 : index
    %15 = vector.load %arg2[%c0_4, %c0_5] : memref<8x128xf32, #tpu.memory_space<vmem>>, vector<8x128xf32>
    %16 = arith.mulf %15, %15 : vector<8x128xf32>
    %cst_6 = arith.constant dense<0.000000e+00> : vector<8xf32>
    %17 = vector.multi_reduction <add>, %16, %cst_6 [1] : vector<8x128xf32> to vector<8xf32>
    %18 = vector.shape_cast %17 : vector<8xf32> to vector<8x1xf32>
    %cst_7 = arith.constant 9.99999996E-13 : f32
    %19 = vector.broadcast %cst_7 : f32 to vector<8x1xf32>
    %20 = arith.maximumf %18, %19 : vector<8x1xf32>
    %21 = math.rsqrt %20 : vector<8x1xf32>
    %22 = vector.broadcast %21 : vector<8x1xf32> to vector<8x128xf32>
    %23 = arith.mulf %15, %22 : vector<8x128xf32>
    %24 = vector.broadcast %0 : f32 to vector<8x128xf32>
    %25 = arith.mulf %23, %24 : vector<8x128xf32>
    %26 = arith.truncf %25 : vector<8x128xf32> to vector<8x128xbf16>
    %c0_8 = arith.constant 0 : index
    %c0_9 = arith.constant 0 : index
    %27 = vector.load %arg4[%c0_8, %c0_9] : memref<8x128xf32, #tpu.memory_space<vmem>>, vector<8x128xf32>
    %28 = arith.mulf %27, %27 : vector<8x128xf32>
    %cst_10 = arith.constant dense<0.000000e+00> : vector<8xf32>
    %29 = vector.multi_reduction <add>, %28, %cst_10 [1] : vector<8x128xf32> to vector<8xf32>
    %30 = vector.shape_cast %29 : vector<8xf32> to vector<8x1xf32>
    %cst_11 = arith.constant 9.99999996E-13 : f32
    %31 = vector.broadcast %cst_11 : f32 to vector<8x1xf32>
    %32 = arith.maximumf %30, %31 : vector<8x1xf32>
    %33 = math.rsqrt %32 : vector<8x1xf32>
    %34 = vector.broadcast %33 : vector<8x1xf32> to vector<8x128xf32>
    %35 = arith.mulf %27, %34 : vector<8x128xf32>
    %36 = arith.truncf %35 : vector<8x128xf32> to vector<8x128xbf16>
    %c0_12 = arith.constant 0 : index
    %c0_13 = arith.constant 0 : index
    %37 = vector.load %arg5[%c0_12, %c0_13] : memref<8x128xf32, #tpu.memory_space<vmem>>, vector<8x128xf32>
    %38 = arith.mulf %37, %37 : vector<8x128xf32>
    %cst_14 = arith.constant dense<0.000000e+00> : vector<8xf32>
    %39 = vector.multi_reduction <add>, %38, %cst_14 [1] : vector<8x128xf32> to vector<8xf32>
    %40 = vector.shape_cast %39 : vector<8xf32> to vector<8x1xf32>
    %cst_15 = arith.constant 9.99999996E-13 : f32
    %41 = vector.broadcast %cst_15 : f32 to vector<8x1xf32>
    %42 = arith.maximumf %40, %41 : vector<8x1xf32>
    %43 = math.rsqrt %42 : vector<8x1xf32>
    %44 = vector.broadcast %43 : vector<8x1xf32> to vector<8x128xf32>
    %45 = arith.mulf %37, %44 : vector<8x128xf32>
    %46 = arith.truncf %45 : vector<8x128xf32> to vector<8x128xbf16>
    %47 = arith.index_cast %2 : i32 to index
    %c0_16 = arith.constant 0 : index
    %48 = vector.load %arg4[%47, %c0_16] : memref<8x128xf32, #tpu.memory_space<vmem>>, vector<8x128xf32>
    %49 = arith.mulf %48, %48 : vector<8x128xf32>
    %cst_17 = arith.constant dense<0.000000e+00> : vector<8xf32>
    %50 = vector.multi_reduction <add>, %49, %cst_17 [1] : vector<8x128xf32> to vector<8xf32>
    %51 = vector.shape_cast %50 : vector<8xf32> to vector<8x1xf32>
    %cst_18 = arith.constant 9.99999996E-13 : f32
    %52 = vector.broadcast %cst_18 : f32 to vector<8x1xf32>
    %53 = arith.maximumf %51, %52 : vector<8x1xf32>
    %54 = math.rsqrt %53 : vector<8x1xf32>
    %55 = vector.broadcast %54 : vector<8x1xf32> to vector<8x128xf32>
    %56 = arith.mulf %48, %55 : vector<8x128xf32>
    %57 = arith.truncf %56 : vector<8x128xf32> to vector<8x128xbf16>
    %58 = arith.index_cast %2 : i32 to index
    %c0_19 = arith.constant 0 : index
    %59 = vector.load %arg5[%58, %c0_19] : memref<8x128xf32, #tpu.memory_space<vmem>>, vector<8x128xf32>
    %60 = arith.mulf %59, %59 : vector<8x128xf32>
    %cst_20 = arith.constant dense<0.000000e+00> : vector<8xf32>
    %61 = vector.multi_reduction <add>, %60, %cst_20 [1] : vector<8x128xf32> to vector<8xf32>
    %62 = vector.shape_cast %61 : vector<8xf32> to vector<8x1xf32>
    %cst_21 = arith.constant 9.99999996E-13 : f32
    %63 = vector.broadcast %cst_21 : f32 to vector<8x1xf32>
    %64 = arith.maximumf %62, %63 : vector<8x1xf32>
    %65 = math.rsqrt %64 : vector<8x1xf32>
    %66 = vector.broadcast %65 : vector<8x1xf32> to vector<8x128xf32>
    %67 = arith.mulf %59, %66 : vector<8x128xf32>
    %68 = arith.truncf %67 : vector<8x128xf32> to vector<8x128xbf16>
    %cst_22 = arith.constant dense<0.000000e+00> : vector<8x8xf32>
    %69 = tpu.matmul %14, %36, %cst_22 {dimension_numbers = #tpu.dot_dimension_numbers<[1], [1], [0], [0], [0, 0, 1, 0], [], []>} : vector<8x128xbf16>, vector<8x128xbf16>, vector<8x8xf32> -> vector<8x8xf32>
    %cst_23 = arith.constant dense<0xFF800000> : vector<8xf32>
    %70 = vector.multi_reduction <maximumf>, %69, %cst_23 [1] : vector<8x8xf32> to vector<8xf32>
    %71 = vector.shape_cast %70 : vector<8xf32> to vector<8x1xf32>
    %72 = vector.broadcast %71 : vector<8x1xf32> to vector<8x8xf32>
    %73 = arith.subf %69, %72 : vector<8x8xf32>
    %74 = math.exp %73 : vector<8x8xf32>
    %cst_24 = arith.constant dense<0.000000e+00> : vector<8xf32>
    %75 = vector.multi_reduction <add>, %74, %cst_24 [1] : vector<8x8xf32> to vector<8xf32>
    %76 = vector.shape_cast %75 : vector<8xf32> to vector<8x1xf32>
    %77 = math.log %76 : vector<8x1xf32>
    %78 = arith.addf %71, %77 : vector<8x1xf32>
    %79 = arith.extf %14 : vector<8x128xbf16> to vector<8x128xf32>
    %80 = arith.extf %57 : vector<8x128xbf16> to vector<8x128xf32>
    %81 = arith.mulf %79, %80 : vector<8x128xf32>
    %cst_25 = arith.constant dense<0.000000e+00> : vector<8xf32>
    %82 = vector.multi_reduction <add>, %81, %cst_25 [1] : vector<8x128xf32> to vector<8xf32>
    %83 = vector.shape_cast %82 : vector<8xf32> to vector<8x1xf32>
    %84 = arith.subf %78, %83 : vector<8x1xf32>
    %cst_26 = arith.constant dense<0.000000e+00> : vector<8x8xf32>
    %85 = tpu.matmul %26, %46, %cst_26 {dimension_numbers = #tpu.dot_dimension_numbers<[1], [1], [0], [0], [0, 0, 1, 0], [], []>} : vector<8x128xbf16>, vector<8x128xbf16>, vector<8x8xf32> -> vector<8x8xf32>
    %cst_27 = arith.constant dense<0xFF800000> : vector<8xf32>
    %86 = vector.multi_reduction <maximumf>, %85, %cst_27 [1] : vector<8x8xf32> to vector<8xf32>
    %87 = vector.shape_cast %86 : vector<8xf32> to vector<8x1xf32>
    %88 = vector.broadcast %87 : vector<8x1xf32> to vector<8x8xf32>
    %89 = arith.subf %85, %88 : vector<8x8xf32>
    %90 = math.exp %89 : vector<8x8xf32>
    %cst_28 = arith.constant dense<0.000000e+00> : vector<8xf32>
    %91 = vector.multi_reduction <add>, %90, %cst_28 [1] : vector<8x8xf32> to vector<8xf32>
    %92 = vector.shape_cast %91 : vector<8xf32> to vector<8x1xf32>
    %93 = math.log %92 : vector<8x1xf32>
    %94 = arith.addf %87, %93 : vector<8x1xf32>
    %95 = arith.extf %26 : vector<8x128xbf16> to vector<8x128xf32>
    %96 = arith.extf %68 : vector<8x128xbf16> to vector<8x128xf32>
    %97 = arith.mulf %95, %96 : vector<8x128xf32>
    %cst_29 = arith.constant dense<0.000000e+00> : vector<8xf32>
    %98 = vector.multi_reduction <add>, %97, %cst_29 [1] : vector<8x128xf32> to vector<8xf32>
    %99 = vector.shape_cast %98 : vector<8xf32> to vector<8x1xf32>
    %100 = arith.subf %94, %99 : vector<8x1xf32>
    %101 = arith.addf %84, %100 : vector<8x1xf32>
    %c0_30 = arith.constant 0 : index
    %c0_31 = arith.constant 0 : index
    %102 = vector.load %arg6[%c0_30, %c0_31] : memref<8x1xf32, #tpu.memory_space<vmem>>, vector<8x1xf32>
    tpu.vector_store %arg6[%c0_30, %c0_31], %101 {strides = array<i32>} : memref<8x1xf32, #tpu.memory_space<vmem>>, vector<8x1xf32>,
    return
  }
  func.func @transform_0(%arg0: i32) -> (i32, i32) {
    %c0_i32 = arith.constant 0 : i32
    %c0_i32_0 = arith.constant 0 : i32
    %c0_i32_1 = arith.constant 0 : i32
    return %c0_i32, %c0_i32_0 : i32, i32
  }
  func.func @transform_1(%arg0: i32) -> (i32, i32) {
    %c0_i32 = arith.constant 0 : i32
    %c0_i32_0 = arith.constant 0 : i32
    return %arg0, %c0_i32 : i32, i32
  }
  func.func @transform_2(%arg0: i32) -> (i32, i32) {
    %c0_i32 = arith.constant 0 : i32
    %c0_i32_0 = arith.constant 0 : i32
    return %arg0, %c0_i32 : i32, i32
  }
  func.func @transform_3(%arg0: i32) -> (i32, i32) {
    %c0_i32 = arith.constant 0 : i32
    %c0_i32_0 = arith.constant 0 : i32
    %c0_i32_1 = arith.constant 0 : i32
    return %c0_i32, %c0_i32_0 : i32, i32
  }
  func.func @transform_4(%arg0: i32) -> (i32, i32) {
    %c0_i32 = arith.constant 0 : i32
    %c0_i32_0 = arith.constant 0 : i32
    %c0_i32_1 = arith.constant 0 : i32
    return %c0_i32, %c0_i32_0 : i32, i32
  }
  func.func @transform_5(%arg0: i32) -> (i32, i32) {
    %c0_i32 = arith.constant 0 : i32
    %c0_i32_0 = arith.constant 0 : i32
    return %arg0, %c0_i32 : i32, i32
  }
}

</mosaic_0001>

<bundles_post_ra>
// kernel: tpu_custom_call.1
= control target key start
LH: loop header
LB: loop body
LE: loop exit
PB: predicated region body
PF: predicated region fallthrough
CT: control target
= control target key end

     0   :  { %11 = vsyncpa [#allocation4], 0  ;;  %s458_s0 = inlined_call_operand.<no memory space> [shape: f32[1,1], index: 0, kind: input, shape index: {}]   ;;  %s459_s1 = inlined_call_operand.hbm [shape: f32[8,128], index: 1, kind: input, shape index: {}]   ;;  %s460_s2 = inlined_call_operand.hbm [shape: f32[8,128], index: 2, kind: input, shape index: {}]   ;;  %s461_s3 = inlined_call_operand.hbm [shape: f32[8,128], index: 3, kind: input, shape index: {}]   ;;  %s462_s4 = inlined_call_operand.hbm [shape: f32[8,128], index: 4, kind: input, shape index: {}]   ;;  %s463_s5 = inlined_call_operand.vmem [shape: f32[8,1], index: 5, kind: output, shape index: {}]  }
   0x1   :  { %12 = vsyncpa [#allocation6], 0  ;;  %s32_s20 = sshll.u32 %s460_s2, 4  ;;  %s33_s20 = int_to_ptr.hbm [resolvable:$true] %s32_s20 }
   0x2   :  { %13 = vsyncpa [#allocation9], 0  ;;  %s385_s21 = smov [#allocation5]   ;;  %s21_s25 = sshll.u32 %s459_s1, 4  ;;  %s22_s25 = int_to_ptr.hbm [resolvable:$true] %s21_s25 }
   0x3   :  { %s34_s22 = sshll.u32 %s385_s21, 4  ;;  %s386_s26 = smov [#allocation3]   ;;  %s35_s22 = int_to_ptr.vmem [resolvable:$true] %s34_s22 }
   0x4   :  { %37 = dma.hbm_to_vmem [thread:$0]  %s33_s20, 128, %s35_s22, [#allocation6]  }
   0x5   :  { %s23_s27 = sshll.u32 %s386_s26, 4  ;;  %s43_s30 = sshll.u32 %s461_s3, 4  ;;  %s24_s27 = int_to_ptr.vmem [resolvable:$true] %s23_s27  ;;  %s44_s30 = int_to_ptr.hbm [resolvable:$true] %s43_s30 }
   0x6   :  { %26 = dma.hbm_to_vmem [thread:$0]  %s22_s25, 128, %s24_s27, [#allocation4]  }
   0x7   :  { %s54_s7 = sshll.u32 %s462_s4, 4  ;;  %s387_s8 = smov [#allocation7]   ;;  %s55_s7 = int_to_ptr.hbm [resolvable:$true] %s54_s7 }
   0x8   :  { %s45_s9 = sshll.u32 %s387_s8, 4  ;;  %s388_s1 = smov [#allocation8]   ;;  %s46_s9 = int_to_ptr.vmem [resolvable:$true] %s45_s9 }
   0x9   :  { %48 = dma.hbm_to_vmem [thread:$0]  %s44_s30, 128, %s46_s9, [#allocation6]  }
   0xa   :  { %s56_s10 = sshll.u32 %s388_s1, 4  ;;  %s57_s10 = int_to_ptr.vmem [resolvable:$true] %s56_s10 }
   0xb   :  { %59 = dma.hbm_to_vmem [thread:$0]  %s55_s7, 128, %s57_s10, [#allocation9]  }
   0xc   :  { %379 = dma.done.wait [#allocation4], 128  }
   0xd   :  { %380 = vsyncadd [#allocation4], 4294967168 }
   0xe   :  { %381 = dma.done.wait [#allocation6], 256  }
   0xf   :  { %382 = vsyncadd [#allocation6], 4294967040 }
  0x10   :  { %383 = dma.done.wait [#allocation9], 128  }
  0x11   :  { %384 = vsyncadd [#allocation9], 4294967168  ;;  %v431_v0 = vld [vmem:[#allocation7] sm:$0xff]  ;;  %v79_v1 = vld [vmem:[#allocation5] sm:$0xff]  ;;  %v95_v41 = vstv %s458_s0  ;;  %vm199_vm15 = vcmask 64512  }
  0x12   :  { %v117_v2 = vmul.f32 %v431_v0, %v431_v0  ;;  %v80_v3 = vmul.f32 %v79_v1, %v79_v1  ;;  %v435_v4 = vld [vmem:[#allocation8] sm:$0xff]  ;;  %v437_v5 = vld [vmem:[#allocation3] sm:$0xff] }
  0x13   :  { %v134_v6 = vmul.f32 %v435_v4, %v435_v4  ;;  %v99_v7 = vmul.f32 %v437_v5, %v437_v5 }
  0x14   :  { %118 = vadd.xlane.f32.xlu0 %v117_v2  ;;  %81 = vadd.xlane.f32.xlu1 %v80_v3 }
  0x15   :  { %153 = vadd.xlane.f32.xlu2 %v117_v2 }
  0x1c   :  { %135 = vadd.xlane.f32.xlu0 %v134_v6  ;;  %100 = vadd.xlane.f32.xlu1 %v99_v7 }
  0x1d   :  { %171 = vadd.xlane.f32.xlu2 %v134_v6 }
  0x87   :  { %v119_v8 = vpop.xlane.xlu0 %118  ;;  %v82_v9 = vpop.xlane.xlu1 %81 }
  0x88   :  { %v120_v10 = vmax.f32 %v119_v8, 1e-12  ;;  %v83_v11 = vmax.f32 %v82_v9, 1e-12  ;;  %v154_v55 = vpop.xlane.xlu2 %153 }
  0x89   :  { %v155_v56 = vmax.f32 %v154_v55, 1e-12 }
  0x8a   :  { %263 = vrsqrt.f32 %v120_v10  ;;  %vm127_vm2 = vweird.f32 %v120_v10  ;;  %vm90_vm3 = vweird.f32 %v83_v11 }
  0x8b   :  { %265 = vrsqrt.f32 %v83_v11  ;;  %vm162_vm12 = vweird.f32 %v155_v56 }
  0x8f   :  { %v136_v12 = vpop.xlane.xlu0 %135  ;;  %v101_v13 = vpop.xlane.xlu1 %100 }
  0x90   :  { %v264_v14 = vpop.eup %263  ;;  %v137_v15 = vmax.f32 %v136_v12, 1e-12  ;;  %v102_v16 = vmax.f32 %v101_v13, 1e-12  ;;  %v172_v13 = vpop.xlane.xlu2 %171 }
  0x91   :  { %v266_v17 = vpop.eup %265  ;;  %v122_v18 = vmul.f32 %v264_v14, %v120_v10  ;;  %vm128_vm0 = vweird.f32 %v264_v14 }
  0x92   :  { %v85_v19 = vmul.f32 %v266_v17, %v83_v11  ;;  %267 = vrsqrt.f32 %v137_v15  ;;  %vm91_vm1 = vweird.f32 %v266_v17  ;;  %vm129_vm4 = vmor %vm127_vm2, %vm128_vm0  ;;  %vm144_vm8 = vweird.f32 %v137_v15 }
  0x93   :  { %v123_v20 = vmul.f32 %v264_v14, %v122_v18  ;;  %269 = vrsqrt.f32 %v102_v16  ;;  %vm92_vm5 = vmor %vm90_vm3, %vm91_vm1  ;;  %vm109_vm9 = vweird.f32 %v102_v16  ;;  %vm250_vm3 = vcmask 7168  }
  0x94   :  { %v86_v21 = vmul.f32 %v266_v17, %v85_v19  ;;  %271 = vrsqrt.f32 %v155_v56 }
  0x95   :  { %v124_v22 = vmul.f32 0.5, %v123_v20 }
  0x96   :  { %v87_v23 = vmul.f32 0.5, %v86_v21 }
  0x97   :  { %v125_v24 = vsub.f32 1.5, %v124_v22 }
  0x98   :  { %v268_v25 = vpop.eup %267  ;;  %v88_v26 = vsub.f32 1.5, %v87_v23 }
  0x99   :  { %v270_v27 = vpop.eup %269  ;;  %v139_v28 = vmul.f32 %v268_v25, %v137_v15  ;;  %v126_v29 = vmul.f32 %v264_v14, %v125_v24  ;;  %vm145_vm6 = vweird.f32 %v268_v25 }
  0x9a   :  { %v104_v30 = vmul.f32 %v270_v27, %v102_v16  ;;  %v89_v31 = vmul.f32 %v266_v17, %v88_v26  ;;  %vm110_vm7 = vweird.f32 %v270_v27  ;;  %vm146_vm10 = vmor %vm144_vm8, %vm145_vm6  ;;  %v272_v57 = vpop.eup %271 }
  0x9b   :  { %v140_v32 = vmul.f32 %v268_v25, %v139_v28  ;;  %v130_v33 = vsel %vm129_vm4, %v264_v14, %v126_v29  ;;  %vm111_vm11 = vmor %vm109_vm9, %vm110_vm7  ;;  %v157_v58 = vmul.f32 %v272_v57, %v155_v56  ;;  %vm163_vm13 = vweird.f32 %v272_v57 }
  0x9c   :  { %v105_v34 = vmul.f32 %v270_v27, %v104_v30  ;;  %v131_v35 = vmul.f32 %v130_v33, %v431_v0  ;;  %v93_v36 = vsel %vm92_vm5, %v266_v17, %v89_v31  ;;  %vm164_vm14 = vmor %vm162_vm12, %vm163_vm13  ;;  %v173_v14 = vmax.f32 %v172_v13, 1e-12 }
  0x9d   :  { %v141_v37 = vmul.f32 0.5, %v140_v32  ;;  %v94_v38 = vmul.f32 %v93_v36, %v79_v1  ;;  %v158_v59 = vmul.f32 %v272_v57, %v157_v58 }
  0x9e   :  { %v106_v39 = vmul.f32 0.5, %v105_v34  ;;  %v132_v40 = vpack.c.bf16 %v131_v35, %v131_v35  ;;  %273 = vrsqrt.f32 %v173_v14  ;;  %vm180_vm0 = vweird.f32 %v173_v14 }
  0x9f   :  { %v142_v42 = vsub.f32 1.5, %v141_v37  ;;  %v96_v44 = vmul.f32 %v95_v41, %v94_v38  ;;  %v159_v60 = vmul.f32 0.5, %v158_v59 }
  0xa0   :  { %v107_v43 = vsub.f32 1.5, %v106_v39  ;;  %193 = vmatpush.bf16.xpose.msra.mxu0 %v132_v40 }
  0xa1   :  { %v143_v45 = vmul.f32 %v268_v25, %v142_v42  ;;  %v97_v50 = vpack.c.bf16 %v96_v44, %v96_v44  ;;  %v160_v61 = vsub.f32 1.5, %v159_v60 }
  0xa2   :  { %v108_v46 = vmul.f32 %v270_v27, %v107_v43 }
  0xa3   :  { %v147_v47 = vsel %vm146_vm10, %v268_v25, %v143_v45  ;;  %v161_v62 = vmul.f32 %v272_v57, %v160_v61  ;;  %v212_v9 = vunpack.c.l.bf16 %v97_v50 }
  0xa4   :  { %v148_v48 = vmul.f32 %v147_v47, %v435_v4  ;;  %v112_v49 = vsel %vm111_vm11, %v270_v27, %v108_v46  ;;  %v274_v15 = vpop.eup %273 }
  0xa5   :  { %v113_v51 = vmul.f32 %v112_v49, %v437_v5  ;;  %v165_v2 = vsel %vm164_vm14, %v272_v57, %v161_v62  ;;  %v175_v16 = vmul.f32 %v274_v15, %v173_v14  ;;  %vm181_vm1 = vweird.f32 %v274_v15 }
  0xa6   :  { %v149_v52 = vpack.c.bf16 %v148_v48, %v148_v48  ;;  %v166_v3 = vmul.f32 %v165_v2, %v431_v0  ;;  %vm182_vm2 = vmor %vm180_vm0, %vm181_vm1 }
  0xa7   :  { %194 = vmatmul.bf16.vlgmr.msra.gmra.mxu0 %v97_v50  ;;  %v114_v53 = vmul.f32 %v113_v51, %v95_v41  ;;  %v176_v17 = vmul.f32 %v274_v15, %v175_v16 }
  0xa8   :  { %225 = vmatpush.bf16.xpose.msra.mxu1 %v149_v52  ;;  %v167_v7 = vpack.c.bf16 %v166_v3, %v166_v3 }
  0xa9   :  { %v115_v54 = vpack.c.bf16 %v114_v53, %v114_v53  ;;  %v177_v18 = vmul.f32 0.5, %v176_v17 }
  0xaa   :  { %v213_v10 = vunpack.c.l.bf16 %v167_v7 }
  0xab   :  { %v178_v19 = vsub.f32 1.5, %v177_v18  ;;  %v243_v31 = vunpack.c.l.bf16 %v115_v54 }
  0xac   :  { %v214_v12 = vmul.f32 %v213_v10, %v212_v9 }
  0xad   :  { %v179_v20 = vmul.f32 %v274_v15, %v178_v19 }
  0xaf   :  { %226 = vmatmul.bf16.vlgmr.msra.gmra.mxu1 %v115_v54  ;;  %v183_v23 = vsel %vm182_vm2, %v274_v15, %v179_v20 }
  0xb0   :  { %v184_v24 = vmul.f32 %v183_v23, %v435_v4 }
  0xb2   :  { %v185_v29 = vpack.c.bf16 %v184_v24, %v184_v24 }
  0xb4   :  { %v244_v32 = vunpack.c.l.bf16 %v185_v29 }
  0xb6   :  { %v245_v34 = vmul.f32 %v244_v32, %v243_v31 }
 0x124   :  { %v195_v63 = vpop.f32.mrf.mxu0 }
 0x125   :  { %v200_v1 = vsel %vm199_vm15, %v195_v63, -inf }
 0x126   :  { %201 = vmax.xlane.f32.xlu0 %v200_v1 }
 0x12c   :  { %v197_v5 = vpop.f32.mrf.mxu0  ;;  %v227_v6 = vpop.f32.mrf.mxu1 }
 0x12d   :  { %v231_v8 = vsel %vm199_vm15, %v227_v6, -inf }
 0x12e   :  { %232 = vmax.xlane.f32.xlu1 %v231_v8 }
 0x134   :  { %v229_v11 = vpop.f32.mrf.mxu1 }
 0x136   :  { %215 = vadd.xlane.f32.xlu1 %v214_v12 }
 0x199   :  { %v202_v0 = vpop.xlane.xlu0 %201 }
 0x19a   :  { %v203_v21 = vsub.f32 %v195_v63, %v202_v0 }
 0x19c   :  { %v204_v22 = vmul.f32 1.442695, %v203_v21 }
 0x19e   :  { %275 = vpow2.f32 %v204_v22 }
 0x1a1   :  { %v233_v25 = vpop.xlane.xlu1 %232 }
 0x1a2   :  { %v234_v26 = vsub.f32 %v227_v6, %v233_v25 }
 0x1a4   :  { %v276_v27 = vpop.eup %275  ;;  %v235_v28 = vmul.f32 1.442695, %v234_v26 }
 0x1a5   :  { %v206_v30 = vsel %vm199_vm15, %v276_v27, 0.0 }
 0x1a6   :  { %277 = vpow2.f32 %v235_v28  ;;  %207 = vadd.xlane.f32.xlu2 %v206_v30 }
 0x1a9   :  { %v216_v43 = vpop.xlane.xlu1 %215 }
 0x1ac   :  { %v278_v33 = vpop.eup %277 }
 0x1ad   :  { %v237_v35 = vsel %vm199_vm15, %v278_v33, 0.0 }
 0x1ae   :  { %246 = vadd.xlane.f32.xlu2 %v245_v34  ;;  %238 = vadd.xlane.f32.xlu0 %v237_v35 }
 0x219   :  { %v208_v36 = vpop.xlane.xlu2 %207 }
 0x21a   :  { %279 = vlog2.f32 %v208_v36 }
 0x220   :  { %v280_v37 = vpop.eup %279 }
 0x221   :  { %v239_v4 = vpop.xlane.xlu0 %238  ;;  %v210_v38 = vmul.f32 0.6931472, %v280_v37  ;;  %v247_v44 = vpop.xlane.xlu2 %246 }
 0x222   :  { %281 = vlog2.f32 %v239_v4 }
 0x223   :  { %v211_v40 = vadd.f32 %v210_v38, %v202_v0 }
 0x225   :  { %v217_v45 = vsub.f32 %v211_v40, %v216_v43 }
 0x228   :  { %v282_v39 = vpop.eup %281 }
 0x229   :  { %v241_v41 = vmul.f32 0.6931472, %v282_v39 }
 0x22b   :  { %v242_v42 = vadd.f32 %v241_v41, %v233_v25 }
 0x22d   :  { %v248_v46 = vsub.f32 %v242_v42, %v247_v44 }
 0x22f   :  { %v249_v47 = vadd.f32 %v248_v46, %v217_v45 }
 0x231   :  { %251 = vst.msk [vmem:[%s463_s5] sm:$0xff] %vm250_vm3, %v249_v47 }
 0x232   :  { %256 = vsyncpa [#allocation4], 1 }
 0x233   :  { %257 = vsyncpa [#allocation6], 1 }
 0x234   :  { %258 = vsyncpa [#allocation9], 1 }

</bundles_post_ra>
